<compile_context>
chip_gen: v6e
topology: v6e:2x2x1
jax: 0.10.0
libtpu: 0.0.40
codegen_flags: <defaults>
</compile_context>

<pallas_src>
import jax
import jax.numpy as jnp
from jax.experimental import pallas as pl
from jax.experimental.pallas import tpu as pltpu


def _round_up(x, m):
    return (x + m - 1) // m * m


def _expert_ffn_kernel(fwd_ref, cw_ref, wi_ref, wo_ref, hid_ref, rs_ref,
                       o_ref, acc_ref):
    # Grid: (token_tile i, expert e, d_ff chunk k).
    # fwd_ref: (tm, d_model)      layer-normed tokens, native dtype (e.g. bf16)
    # cw_ref:  (tm, 1) f32        router_prob if this token routed to expert e else 0
    # wi_ref:  (tff, d_model)     chunk of wi_e   (PyTorch [out, in] layout)
    # wo_ref:  (d_model, tff)     chunk of wo_e   (PyTorch [out, in] layout)
    # hid_ref: (tm, d_model)      original hidden states (residual input)
    # rs_ref:  (tm, 1) f32        max_prob * (1 - routed)  (dropped/unrouted tokens)
    # o_ref:   (tm, d_model)
    # acc_ref: (tm, d_model) f32  accumulator over (expert, d_ff chunk)
    e = pl.program_id(1)
    k = pl.program_id(2)

    @pl.when(jnp.logical_and(e == 0, k == 0))
    def _init():
        acc_ref[...] = jnp.zeros_like(acc_ref)

    x = fwd_ref[...]                                   # native dtype -> MXU
    # h = relu(x @ wi_chunk^T): contract d_model of both operands (trans-B).
    h = jax.lax.dot_general(
        x, wi_ref[...],
        dimension_numbers=(((1,), (1,)), ((), ())),
        preferred_element_type=jnp.float32)            # (tm, tff) f32
    h = jnp.maximum(h, 0.0).astype(wo_ref.dtype)       # ReLU, back to weight dtype

    # chunk contribution = h @ wo_chunk^T, scaled by the per-token combine weight
    # (prob if routed to expert e and within capacity, else 0) in f32.
    contrib = jax.lax.dot_general(
        h, wo_ref[...],
        dimension_numbers=(((1,), (1,)), ((), ())),
        preferred_element_type=jnp.float32)            # (tm, d_model) f32
    acc_ref[...] += cw_ref[...] * contrib

    @pl.when(jnp.logical_and(e == pl.num_programs(1) - 1,
                             k == pl.num_programs(2) - 1))
    def _finalize():
        # out = hidden + max_prob*(1-routed)*forwarded + sum_e prob*mask_e*expert_e(fwd)
        o_ref[...] = (hid_ref[...].astype(jnp.float32)
                      + rs_ref[...] * fwd_ref[...].astype(jnp.float32)
                      + acc_ref[...]).astype(o_ref.dtype)


def switch_sparse_mlp(hidden_states, ln_weight, router_w, wi, wo, *,
                      expert_capacity, eps=1e-6, tm=512, tff=512,
                      vmem_limit_bytes=64 * 1024 * 1024):
    """Forward of SwitchSparseMLP (eval mode).

    hidden_states: [B, S, d_model]
    ln_weight:     [d_model]                      T5/RMS LayerNorm scale
    router_w:      [num_experts, d_model]         classifier weight (bias=False)
    wi:            [num_experts, d_ff, d_model]   expert wi  (PyTorch [out, in])
    wo:            [num_experts, d_model, d_ff]   expert wo  (PyTorch [out, in])
    """
    B, S, d_model = hidden_states.shape
    E, d_ff, _ = wi.shape
    dtype = hidden_states.dtype
    T = B * S

    # ------------------ Router (plain JAX; tiny compute) ------------------
    # TODO(synk): top-1 argmax + capacity cumsum is a sequential scan over the
    # sequence with no clean Pallas win; it stays in XLA. Expert FFNs (the
    # heavy part) run in the Pallas kernel below. Dropout is eval-mode identity.
    x2d = hidden_states.reshape(T, d_model)
    x32 = x2d.astype(jnp.float32)
    var = jnp.mean(x32 * x32, axis=-1, keepdims=True)
    fwd = (x32 * jax.lax.rsqrt(var + eps)).astype(dtype) * ln_weight   # forwarded_states
    fwd32 = fwd.astype(jnp.float32)

    logits = fwd32 @ router_w.astype(jnp.float32).T                    # [T, E]
    probs = jax.nn.softmax(logits, axis=-1)
    expert_idx = jnp.argmax(probs, axis=-1)
    one_hot = jax.nn.one_hot(expert_idx, E, dtype=jnp.int32)           # [T, E]
    priority = jnp.cumsum(one_hot.reshape(B, S, E), axis=1).reshape(T, E)
    mask = (one_hot * (priority <= expert_capacity)).astype(jnp.float32)
    max_prob = jnp.max(probs, axis=-1, keepdims=True)                  # [T, 1]
    routed = jnp.sum(mask, axis=-1, keepdims=True)                     # [T, 1] 0/1

    # Per-(expert, token) combine weight and per-token "kept layer-norm output" scale.
    combine = (mask * max_prob).T[:, :, None]                          # [E, T, 1] f32
    resid_scale = max_prob * (1.0 - routed)                            # [T, 1]  f32

    # ------------------------------ Tiling --------------------------------
    # TODO(synk): compute is dense over experts (each token tile visits all E
    # experts, masked); a gathered grouped-matmul dispatch would cut FLOPs ~E x
    # but needs scalar-prefetch gather machinery.
    tm = max(8, min(_round_up(tm, 8), _round_up(T, 8)))
    T_pad = _round_up(T, tm)
    if T_pad != T:   # ragged batch*seq: pad token rows (zero rows contribute zero)
        pad = T_pad - T
        fwd = jnp.pad(fwd, ((0, pad), (0, 0)))
        x2d = jnp.pad(x2d, ((0, pad), (0, 0)))
        combine = jnp.pad(combine, ((0, 0), (0, pad), (0, 0)))
        resid_scale = jnp.pad(resid_scale, ((0, pad), (0, 0)))

    tff = min(tff, d_ff)
    if d_ff % tff != 0 or (tff % 128 != 0 and tff != d_ff):
        tff = d_ff   # fall back to a single chunk (block dim == array dim is legal)

    grid = (T_pad // tm, E, d_ff // tff)

    out2d = pl.pallas_call(
        _expert_ffn_kernel,
        out_shape=jax.ShapeDtypeStruct((T_pad, d_model), dtype),
        grid_spec=pltpu.PrefetchScalarGridSpec(
            num_scalar_prefetch=0,
            grid=grid,
            in_specs=[
                pl.BlockSpec((tm, d_model), lambda i, e, k: (i, 0)),           # fwd
                pl.BlockSpec((None, tm, 1), lambda i, e, k: (e, i, 0)),        # combine
                pl.BlockSpec((None, tff, d_model), lambda i, e, k: (e, k, 0)), # wi chunk
                pl.BlockSpec((None, d_model, tff), lambda i, e, k: (e, 0, k)), # wo chunk
                pl.BlockSpec((tm, d_model), lambda i, e, k: (i, 0)),           # hidden
                pl.BlockSpec((tm, 1), lambda i, e, k: (i, 0)),                 # resid scale
            ],
            out_specs=pl.BlockSpec((tm, d_model), lambda i, e, k: (i, 0)),
            scratch_shapes=[pltpu.VMEM((tm, d_model), jnp.float32)],
        ),
        compiler_params=pltpu.CompilerParams(
            dimension_semantics=("parallel", "arbitrary", "arbitrary"),
            vmem_limit_bytes=vmem_limit_bytes),
    )(fwd, combine, wi, wo, x2d, resid_scale)

    return out2d[:T].reshape(B, S, d_model)


def _reference(hidden_states, ln_weight, router_w, wi, wo, *, expert_capacity,
               eps=1e-6):
    """Pure-JAX f32 mirror of the PyTorch SwitchSparseMLP forward."""
    dtype = hidden_states.dtype
    E = wi.shape[0]
    x32 = hidden_states.astype(jnp.float32)
    var = jnp.mean(x32 * x32, axis=-1, keepdims=True)
    fwd = (x32 * jax.lax.rsqrt(var + eps)).astype(dtype) * ln_weight
    fwd32 = fwd.astype(jnp.float32)
    logits = jnp.einsum("bsd,ed->bse", fwd32, router_w.astype(jnp.float32))
    probs = jax.nn.softmax(logits, axis=-1)
    idx = jnp.argmax(probs, axis=-1)
    one_hot = jax.nn.one_hot(idx, E, dtype=jnp.int32)
    priority = jnp.cumsum(one_hot, axis=-2)
    mask = (one_hot * (priority <= expert_capacity)).astype(jnp.float32)
    max_prob = jnp.max(probs, axis=-1, keepdims=True)
    expert_out = jnp.zeros_like(fwd32)
    for e_i in range(E):
        h = jnp.maximum(
            jnp.einsum("bsd,fd->bsf", fwd32, wi[e_i].astype(jnp.float32)), 0.0)
        y = jnp.einsum("bsf,df->bsd", h, wo[e_i].astype(jnp.float32))
        expert_out = expert_out + mask[..., e_i:e_i + 1] * y
    routed = jnp.sum(mask, axis=-1, keepdims=True)
    next_states = expert_out + (1.0 - routed) * fwd32
    return x32 + max_prob * next_states


if __name__ == "__main__":
    # Small shapes; d_model kept at 128 so output stores are lane-dense.
    B, S, d_model, d_ff, E = 2, 128, 128, 256, 4
    expert_capacity = 20            # < S/E so some tokens are dropped (kept as fwd)
    dtype = jnp.bfloat16

    key = jax.random.PRNGKey(0)
    k_x, k_ln, k_r, k_wi, k_wo = jax.random.split(key, 5)

    hidden_states = jax.random.normal(k_x, (B, S, d_model), jnp.float32).astype(dtype)
    ln_weight = (1.0 + 0.1 * jax.random.normal(k_ln, (d_model,), jnp.float32)).astype(dtype)
    router_w = (0.1 * jax.random.normal(k_r, (E, d_model), jnp.float32)).astype(dtype)
    wi = (0.05 * jax.random.normal(k_wi, (E, d_ff, d_model), jnp.float32)).astype(dtype)
    wo = (0.05 * jax.random.normal(k_wo, (E, d_model, d_ff), jnp.float32)).astype(dtype)

    out = switch_sparse_mlp(hidden_states, ln_weight, router_w, wi, wo,
                            expert_capacity=expert_capacity, tm=128, tff=128)
    out = jax.block_until_ready(out)

    ref = _reference(hidden_states, ln_weight, router_w, wi, wo,
                     expert_capacity=expert_capacity)
    assert out.shape == (B, S, d_model)
    # bf16 operands / bf16 output -> loosened tolerance (accumulation stays f32).
    assert jnp.allclose(out.astype(jnp.float32), ref, atol=5e-2, rtol=5e-2), \
        "mismatch vs reference"

    print("KERNEL_OK")
</pallas_src>

<mosaic_0001>
module attributes {stable_mosaic.version = 11 : i64} {
  func.func @_expert_ffn_kernel(%arg0: i32, %arg1: i32, %arg2: i32, %arg3: memref<128x128xbf16, #tpu.memory_space<vmem>>, %arg4: memref<1x128x1xf32, #tpu.memory_space<vmem>>, %arg5: memref<1x128x128xbf16, #tpu.memory_space<vmem>>, %arg6: memref<1x128x128xbf16, #tpu.memory_space<vmem>>, %arg7: memref<128x128xbf16, #tpu.memory_space<vmem>>, %arg8: memref<128x1xf32, #tpu.memory_space<vmem>>, %arg9: memref<128x128xbf16, #tpu.memory_space<vmem>>, %arg10: memref<128x128xf32, #tpu.memory_space<vmem>>) attributes {dimension_semantics = [#tpu.dimension_semantics<parallel>, #tpu.dimension_semantics<arbitrary>, #tpu.dimension_semantics<arbitrary>], iteration_bounds = array<i64: 2, 4, 2>, scalar_prefetch = 0 : i64, scratch_operands = 1 : i64, tpu.core_type = #tpu.core_type<tc>, window_params = [{transform_indices = @transform_0, window_bounds = array<i64: 128, 128>}, {transform_indices = @transform_1, window_bounds = array<i64: 1, 128, 1>}, {transform_indices = @transform_2, window_bounds = array<i64: 1, 128, 128>}, {transform_indices = @transform_3, window_bounds = array<i64: 1, 128, 128>}, {transform_indices = @transform_4, window_bounds = array<i64: 128, 128>}, {transform_indices = @transform_5, window_bounds = array<i64: 128, 1>}, {transform_indices = @transform_6, window_bounds = array<i64: 128, 128>}]} {
    %c0_i32 = arith.constant 0 : i32
    %0 = arith.cmpi eq, %arg1, %c0_i32 : i32
    %c0_i32_0 = arith.constant 0 : i32
    %1 = arith.cmpi eq, %arg2, %c0_i32_0 : i32
    %2 = arith.andi %0, %1 : i1
    %3 = arith.extui %2 : i1 to i32
    %c0_i32_1 = arith.constant 0 : i32
    %4 = arith.cmpi ne, %3, %c0_i32_1 : i32
    scf.if %4 {
      %cst_19 = arith.constant 0.000000e+00 : f32
      %27 = vector.broadcast %cst_19 : f32 to vector<128x128xf32>
      %c0_20 = arith.constant 0 : index
      %c0_21 = arith.constant 0 : index
      %28 = vector.load %arg10[%c0_20, %c0_21] : memref<128x128xf32, #tpu.memory_space<vmem>>, vector<128x128xf32>
      tpu.vector_store %arg10[%c0_20, %c0_21], %27 {strides = array<i32>} : memref<128x128xf32, #tpu.memory_space<vmem>>, vector<128x128xf32>,
    } else {
    }
    %c0 = arith.constant 0 : index
    %c0_2 = arith.constant 0 : index
    %5 = vector.load %arg3[%c0, %c0_2] : memref<128x128xbf16, #tpu.memory_space<vmem>>, vector<128x128xbf16>
    %c0_3 = arith.constant 0 : index
    %c0_4 = arith.constant 0 : index
    %c0_5 = arith.constant 0 : index
    %6 = vector.load %arg5[%c0_3, %c0_4, %c0_5] : memref<1x128x128xbf16, #tpu.memory_space<vmem>>, vector<1x128x128xbf16>
    %7 = vector.shape_cast %6 : vector<1x128x128xbf16> to vector<128x128xbf16>
    %cst = arith.constant dense<0.000000e+00> : vector<128x128xf32>
    %8 = tpu.matmul %5, %7, %cst {dimension_numbers = #tpu.dot_dimension_numbers<[1], [1], [0], [0], [0, 0, 1, 0], [], []>} : vector<128x128xbf16>, vector<128x128xbf16>, vector<128x128xf32> -> vector<128x128xf32>
    %cst_6 = arith.constant 0.000000e+00 : f32
    %9 = vector.broadcast %cst_6 : f32 to vector<128x128xf32>
    %10 = arith.maximumf %8, %9 : vector<128x128xf32>
    %11 = arith.truncf %10 : vector<128x128xf32> to vector<128x128xbf16>
    %c0_7 = arith.constant 0 : index
    %c0_8 = arith.constant 0 : index
    %c0_9 = arith.constant 0 : index
    %12 = vector.load %arg6[%c0_7, %c0_8, %c0_9] : memref<1x128x128xbf16, #tpu.memory_space<vmem>>, vector<1x128x128xbf16>
    %13 = vector.shape_cast %12 : vector<1x128x128xbf16> to vector<128x128xbf16>
    %cst_10 = arith.constant dense<0.000000e+00> : vector<128x128xf32>
    %14 = tpu.matmul %11, %13, %cst_10 {dimension_numbers = #tpu.dot_dimension_numbers<[1], [1], [0], [0], [0, 0, 1, 0], [], []>} : vector<128x128xbf16>, vector<128x128xbf16>, vector<128x128xf32> -> vector<128x128xf32>
    %c0_11 = arith.constant 0 : index
    %c0_12 = arith.constant 0 : index
    %15 = vector.load %arg10[%c0_11, %c0_12] : memref<128x128xf32, #tpu.memory_space<vmem>>, vector<128x128xf32>
    %c0_13 = arith.constant 0 : index
    %c0_14 = arith.constant 0 : index
    %c0_15 = arith.constant 0 : index
    %16 = vector.load %arg4[%c0_13, %c0_14, %c0_15] : memref<1x128x1xf32, #tpu.memory_space<vmem>>, vector<1x128x1xf32>
    %17 = vector.shape_cast %16 : vector<1x128x1xf32> to vector<128x1xf32>
    %18 = vector.broadcast %17 : vector<128x1xf32> to vector<128x128xf32>
    %19 = arith.mulf %18, %14 : vector<128x128xf32>
    %20 = arith.addf %15, %19 : vector<128x128xf32>
    %c0_16 = arith.constant 0 : index
    %c0_17 = arith.constant 0 : index
    %21 = vector.load %arg10[%c0_16, %c0_17] : memref<128x128xf32, #tpu.memory_space<vmem>>, vector<128x128xf32>
    tpu.vector_store %arg10[%c0_16, %c0_17], %20 {strides = array<i32>} : memref<128x128xf32, #tpu.memory_space<vmem>>, vector<128x128xf32>,
    %c3_i32 = arith.constant 3 : i32
    %22 = arith.cmpi eq, %arg1, %c3_i32 : i32
    %c1_i32 = arith.constant 1 : i32
    %23 = arith.cmpi eq, %arg2, %c1_i32 : i32
    %24 = arith.andi %22, %23 : i1
    %25 = arith.extui %24 : i1 to i32
    %c0_i32_18 = arith.constant 0 : i32
    %26 = arith.cmpi ne, %25, %c0_i32_18 : i32
    scf.if %26 {
      %c0_19 = arith.constant 0 : index
      %c0_20 = arith.constant 0 : index
      %27 = vector.load %arg7[%c0_19, %c0_20] : memref<128x128xbf16, #tpu.memory_space<vmem>>, vector<128x128xbf16>
      %28 = arith.extf %27 : vector<128x128xbf16> to vector<128x128xf32>
      %c0_21 = arith.constant 0 : index
      %c0_22 = arith.constant 0 : index
      %29 = vector.load %arg8[%c0_21, %c0_22] : memref<128x1xf32, #tpu.memory_space<vmem>>, vector<128x1xf32>
      %c0_23 = arith.constant 0 : index
      %c0_24 = arith.constant 0 : index
      %30 = vector.load %arg3[%c0_23, %c0_24] : memref<128x128xbf16, #tpu.memory_space<vmem>>, vector<128x128xbf16>
      %31 = arith.extf %30 : vector<128x128xbf16> to vector<128x128xf32>
      %32 = vector.broadcast %29 : vector<128x1xf32> to vector<128x128xf32>
      %33 = arith.mulf %32, %31 : vector<128x128xf32>
      %34 = arith.addf %28, %33 : vector<128x128xf32>
      %c0_25 = arith.constant 0 : index
      %c0_26 = arith.constant 0 : index
      %35 = vector.load %arg10[%c0_25, %c0_26] : memref<128x128xf32, #tpu.memory_space<vmem>>, vector<128x128xf32>
      %36 = arith.addf %34, %35 : vector<128x128xf32>
      %37 = arith.truncf %36 : vector<128x128xf32> to vector<128x128xbf16>
      %c0_27 = arith.constant 0 : index
      %c0_28 = arith.constant 0 : index
      %38 = vector.load %arg9[%c0_27, %c0_28] : memref<128x128xbf16, #tpu.memory_space<vmem>>, vector<128x128xbf16>
      tpu.vector_store %arg9[%c0_27, %c0_28], %37 {strides = array<i32>} : memref<128x128xbf16, #tpu.memory_space<vmem>>, vector<128x128xbf16>,
    } else {
    }
    return
  }
  func.func @transform_0(%arg0: i32, %arg1: i32, %arg2: i32) -> (i32, i32) {
    %c0_i32 = arith.constant 0 : i32
    %c0_i32_0 = arith.constant 0 : i32
    return %arg0, %c0_i32 : i32, i32
  }
  func.func @transform_1(%arg0: i32, %arg1: i32, %arg2: i32) -> (i32, i32, i32) {
    %c0_i32 = arith.constant 0 : i32
    %c0_i32_0 = arith.constant 0 : i32
    return %arg1, %arg0, %c0_i32 : i32, i32, i32
  }
  func.func @transform_2(%arg0: i32, %arg1: i32, %arg2: i32) -> (i32, i32, i32) {
    %c0_i32 = arith.constant 0 : i32
    %c0_i32_0 = arith.constant 0 : i32
    return %arg1, %arg2, %c0_i32 : i32, i32, i32
  }
  func.func @transform_3(%arg0: i32, %arg1: i32, %arg2: i32) -> (i32, i32, i32) {
    %c0_i32 = arith.constant 0 : i32
    %c0_i32_0 = arith.constant 0 : i32
    return %arg1, %c0_i32, %arg2 : i32, i32, i32
  }
  func.func @transform_4(%arg0: i32, %arg1: i32, %arg2: i32) -> (i32, i32) {
    %c0_i32 = arith.constant 0 : i32
    %c0_i32_0 = arith.constant 0 : i32
    return %arg0, %c0_i32 : i32, i32
  }
  func.func @transform_5(%arg0: i32, %arg1: i32, %arg2: i32) -> (i32, i32) {
    %c0_i32 = arith.constant 0 : i32
    %c0_i32_0 = arith.constant 0 : i32
    return %arg0, %c0_i32 : i32, i32
  }
  func.func @transform_6(%arg0: i32, %arg1: i32, %arg2: i32) -> (i32, i32) {
    %c0_i32 = arith.constant 0 : i32
    %c0_i32_0 = arith.constant 0 : i32
    return %arg0, %c0_i32 : i32, i32
  }
}

</mosaic_0001>

<bundles_post_ra>
// kernel: tpu_custom_call.1
= control target key start
LH: loop header
LB: loop body
LE: loop exit
PB: predicated region body
PF: predicated region fallthrough
CT: control target
= control target key end

     0   :  { %s2535_s0 = inlined_call_operand.vmem [shape: bf16[256,128], index: 0, kind: input, shape index: {}]   ;;  %s2536_s1 = inlined_call_operand.vmem [shape: f32[4,256,1], index: 1, kind: input, shape index: {}]   ;;  %s2537_s2 = inlined_call_operand.vmem [shape: bf16[4,256,128], index: 2, kind: input, shape index: {}]   ;;  %s2538_s3 = inlined_call_operand.vmem [shape: bf16[4,128,256], index: 3, kind: input, shape index: {}]   ;;  %s2539_s4 = inlined_call_operand.vmem [shape: bf16[256,128], index: 4, kind: input, shape index: {}]   ;;  %s2540_s5 = inlined_call_operand.vmem [shape: f32[256,1], index: 5, kind: input, shape index: {}]   ;;  %s2541_s6 = inlined_call_operand.hbm [shape: bf16[256,128], index: 6, kind: output, shape index: {}]  }
   0x1   :  { %2554 = sst [smem:[#allocation19_spill]] %s2537_s2 }
   0x2   :  { %2555 = sst [smem:[#allocation20_spill]] %s2538_s3 }
   0x3   :  { %2556 = sst [smem:[#allocation21_spill]] %s2541_s6 }
   0x4   :  { %11 = vsyncpa [#allocation5], 0 }
   0x5   :  { %13 = vsyncpa [#allocation5 + $0x1], 0  ;;  %s2199_s21 = smov 0   ;;  %s2201_s22 = smov 0  }
   0x6   :  { %s2203_s23 = smov 0   ;;  %s2205_s24 = smov 0  }
   0x7   :  { %s2207_s25 = smov 0   ;;  %s2209_s26 = smov 0  }
   0x8   :  { %s2211_s27 = smov 0   ;;  %s2213_s28 = smov 0  }
   0x9   :  { %s2215_s29 = smov 0   ;;  %s2217_s30 = smov 0  }
   0xa   :  { %s2219_s7 = smov 0   ;;  %s2221_s8 = smov 0  }
   0xb LB: > { %2557 = sst [smem:[#allocation7_spill]] %s2112_s21  ;;  %s1591_s9 = sadd.s32 4294967295, %s2156_s8   ;;  %s2156_s8 = sphi %s2221_s8, %s19_s8   ;;  %s2152_s7 = sphi %s2219_s7, %s2589_s7   ;;  %s2148_s30 = sphi %s2217_s30, %s2588_s30   ;;  %s2144_s29 = sphi %s2215_s29, %s2587_s29   ;;  %s2140_s28 = sphi %s2213_s28, %s2586_s28   ;;  %s2136_s27 = sphi %s2211_s27, %s2585_s27   ;;  %s2132_s26 = sphi %s2209_s26, %s2593_s26   ;;  %s2128_s25 = sphi %s2207_s25, %s2583_s25   ;;  %s2124_s24 = sphi %s2205_s24, %s2582_s24   ;;  %s2120_s23 = sphi %s2203_s23, %s2592_s23   ;;  %s2116_s22 = sphi %s2201_s22, %s2591_s22   ;;  %s2112_s21 = sphi %s2199_s21, %s2590_s21  }
   0xc   : > { %2558 = sst [smem:[#allocation8_spill]] %s2120_s23  ;;  %s1592_s10 = sadd.s32 4294967294, %s2156_s8  }
   0xd   : > { %2559 = sst [smem:[#allocation9_spill]] %s2128_s25  ;;  %s31_s11 = sadd.s32 1, %s2144_s29 }
   0xe   : > { %2560 = sst [smem:[#allocation10_spill]] %s2144_s29  ;;  %s34_s12 = sadd.s32 1, %s2148_s30 }
   0xf   : > { %2561 = sst [smem:[#allocation11_spill]] %s2148_s30  ;;  %p32_p0 = scmp.ge.s32.totalorder %s31_s11, 2 }
  0x10   : > { %2562 = sst [smem:[#allocation12_spill]] %s2152_s7  ;;  %s38_s13 = sadd.s32 1, %s2152_s7 }
  0x11   : > { %s129_s14 = sadd.s32 1, %s2128_s25  ;;  %p136_p1 = scmp.ne.s32.totalorder %s2128_s25, %s2124_s24 }
  0x12   : > { %s2595_s11 = smov (%p32_p0, %s31_s11), 0  ;;  %s2597_s12 = smov (!%p32_p0, %s34_s12), %s2148_s30 }
  0x13   : > { %2563 = sst [smem:[#allocation13_spill]] %s2595_s11  ;;  %s125_s15 = ssub.s32 %s2144_s29, %s2595_s11 }
  0x14   : > { %p137_p2 = scmp.eq.s32.totalorder %s2156_s8, 0  ;;  %p36_p3 = scmp.ge.s32.totalorder %s2597_s12, 4 }
  0x15   : > { %s207_s16 = sadd.s32 1, %s2120_s23  ;;  %p217_p5 = scmp.ne.s32.totalorder %s2120_s23, %s2116_s22 }
  0x16   : > { %p2274_p4 = por %p137_p2, %p136_p1  ;;  %s2599_s12 = smov (%p36_p3, %s2597_s12), 0 }
  0x17   : > { %2565 = sst [smem:[#allocation14_spill]] %s2599_s12  ;;  %s2601_s13 = smov (!%p36_p3, %s38_s13), %s2152_s7 }
  0x18   : > { %s124_s18 = ssub.s32 %s2148_s30, %s2599_s12  ;;  %p218_p6 = scmp.eq.s32.totalorder %s1591_s9, 15 }
  0x19   : > { %p40_p7 = scmp.ge.s32.totalorder %s2601_s13, 2  ;;  %s126_s19 = sor.u32 %s125_s15, %s124_s18 }
  0x1a   : > { %p127_p8 = scmp.eq.s32.totalorder %s126_s19, 0  ;;  %p2285_p9 = por %p218_p6, %p217_p5 }
  0x1b   : > { %s2603_s13 = smov (%p40_p7, %s2601_s13), 0  ;;  %p223_p10 = scmp.ne.s32.totalorder %s2116_s22, %s2112_s21 }
  0x1c   : > { %2567 = sst [smem:[#allocation15_spill]] %s2603_s13  ;;  %s204_s6 = ssub.s32 %s2152_s7, %s2603_s13 }
  0x1d   : > { %s2292_s11 = scalar_select %p127_p8, %s2128_s25, %s129_s14  }
  0x1e   : > { %p205_p11 = scmp.eq.s32.totalorder %s204_s6, 0  ;;  %p224_p12 = scmp.eq.s32.totalorder %s1592_s10, 15 }
  0x1f   : > { %2568 = sst [smem:[#allocation16_spill]] %s2292_s11  ;;  %p1594_p0 = scmp.ge.s32.totalorder %s2156_s8, 16 }
  0x20   : > { %s2299_s2 = scalar_select %p205_p11, %s2120_s23, %s207_s16  }
  0x21   : > { %p2301_p13 = por %p224_p12, %p223_p10  ;;  %240 = sbr.rel (%p1594_p0) target bundleno = 58 (0x3a), region = 16 }
  0x22   : > { %2569 = sst [smem:[#allocation17_spill]] %s2299_s2 }
  0x23   : > { %s2570_s9 = scalar_select %p2301_p13, 1, 0 }
  0x25   : > { %2571 = sst [smem:[#allocation18_spill]] %s2570_s9 }
  0x26   : > { %278 = sbr.rel (!%p2274_p4) target bundleno = 58 (0x3a), region = 32  ;;  %s280_s14 = sand.u32 (%p2274_p4), 1, %s2128_s25  }
  0x27   : > { %s1596_s15 = sshll.u32 (%p2274_p4), %s2148_s30, 5  ;;  %s1595_s18 = sshll.u32 (%p2274_p4), %s280_s14, 6 }
  0x28   : > { %s284_s6 = sadd.s32 (%p2274_p4), %s2144_s29, %s1596_s15  ;;  %s2572_s3 = sld [smem:[#allocation20_spill]] (%p2274_p4) }
  0x29   : > { %s1597_s10 = sshll.u32 (%p2274_p4), %s284_s6, 2  ;;  %s282_s17 = scalar_lea.vmem (%p2274_p4), [#allocation3], %s1595_s18 }
  0x2e   : > { %s2314_s13 = scalar_lea.vmem %s2572_s3, %s1597_s10 }
  0x2f   : > { %v303_v0 = vld [vmem:[%s2314_s13] sm:$0xf]  ;;  %v305_v1 = vld [vmem:[%s2314_s13 + $0x8] sm:$0xf]  ;;  %v307_v2 = vld [vmem:[%s2314_s13 + $0x10] sm:$0xf] }
  0x30   : > { %304 = vst [vmem:[%s282_s17] sm:$0xf] %v303_v0  ;;  %306 = vst [vmem:[%s282_s17 + $0x4] sm:$0xf] %v305_v1  ;;  %v309_v3 = vld [vmem:[%s2314_s13 + $0x18] sm:$0xf] }
  0x31   : > { %308 = vst [vmem:[%s282_s17 + $0x8] sm:$0xf] %v307_v2  ;;  %v311_v4 = vld [vmem:[%s2314_s13 + $0x20] sm:$0xf]  ;;  %v313_v5 = vld [vmem:[%s2314_s13 + $0x28] sm:$0xf] }
  0x32   : > { %310 = vst [vmem:[%s282_s17 + $0xc] sm:$0xf] %v309_v3  ;;  %312 = vst [vmem:[%s282_s17 + $0x10] sm:$0xf] %v311_v4  ;;  %v315_v6 = vld [vmem:[%s2314_s13 + $0x30] sm:$0xf] }
  0x33   : > { %314 = vst [vmem:[%s282_s17 + $0x14] sm:$0xf] %v313_v5  ;;  %v317_v7 = vld [vmem:[%s2314_s13 + $0x38] sm:$0xf]  ;;  %v319_v8 = vld [vmem:[%s2314_s13 + $0x40] sm:$0xf] }
  0x34   : > { %316 = vst [vmem:[%s282_s17 + $0x18] sm:$0xf] %v315_v6  ;;  %318 = vst [vmem:[%s282_s17 + $0x1c] sm:$0xf] %v317_v7  ;;  %v321_v9 = vld [vmem:[%s2314_s13 + $0x48] sm:$0xf] }
  0x35   : > { %320 = vst [vmem:[%s282_s17 + $0x20] sm:$0xf] %v319_v8  ;;  %v323_v10 = vld [vmem:[%s2314_s13 + $0x50] sm:$0xf]  ;;  %v325_v11 = vld [vmem:[%s2314_s13 + $0x58] sm:$0xf] }
  0x36   : > { %322 = vst [vmem:[%s282_s17 + $0x24] sm:$0xf] %v321_v9  ;;  %324 = vst [vmem:[%s282_s17 + $0x28] sm:$0xf] %v323_v10  ;;  %v327_v12 = vld [vmem:[%s2314_s13 + $0x60] sm:$0xf] }
  0x37   : > { %326 = vst [vmem:[%s282_s17 + $0x2c] sm:$0xf] %v325_v11  ;;  %v329_v13 = vld [vmem:[%s2314_s13 + $0x68] sm:$0xf]  ;;  %v331_v14 = vld [vmem:[%s2314_s13 + $0x70] sm:$0xf] }
  0x38   : > { %328 = vst [vmem:[%s282_s17 + $0x30] sm:$0xf] %v327_v12  ;;  %330 = vst [vmem:[%s282_s17 + $0x34] sm:$0xf] %v329_v13  ;;  %v333_v15 = vld [vmem:[%s2314_s13 + $0x78] sm:$0xf] }
  0x39   : > { %332 = vst [vmem:[%s282_s17 + $0x38] sm:$0xf] %v331_v14  ;;  %334 = vst [vmem:[%s282_s17 + $0x3c] sm:$0xf] %v333_v15 }
  0x3a PF: > { %p1598_p1 = scmp.ge.s32.totalorder %s2156_s8, 1  ;;  %p407_p2 = scmp.lt.s32.totalorder %s2156_s8, 17 }
  0x3c   : > { %p408_p3 = pnand %p1598_p1, %p407_p2 }
  0x3d   : > { %s414_s14 = sand.u32 (!%p408_p3), 1, %s2124_s24   ;;  %s2548_s15 = sand.u32 (!%p408_p3), 1, %s2116_s22  }
  0x3e   : > { %411 = sbr.rel (%p408_p3) target bundleno = 778 (0x30a), region = 81  ;;  %s1599_s18 = sshll.u32 (!%p408_p3), %s414_s14, 6 }
  0x3f   : > { %s1600_s13 = sshll.u32 (!%p408_p3), %s2548_s15, 6  ;;  %s1601_s6 = sshll.u32 (!%p408_p3), %s2140_s28, 4 }
  0x40   : > { %p483_p4 = scmp.lt.s32.totalorder (!%p408_p3), %s2136_s27, 3  ;;  %p477_p5 = scmp.lt.s32.totalorder (!%p408_p3), %s1601_s6, 31 }
  0x41   : > { %s1606_s10 = sshll.u32 (!%p408_p3), %s2132_s26, 4  ;;  %p516_p7 = scmp.eq.s32.totalorder (!%p408_p3), %s2136_s27, 0 }
  0x42   : > { %p495_p6 = scmp.lt.s32.totalorder (!%p408_p3), %s1606_s10, 31  ;;  %p517_p8 = scmp.eq.s32.totalorder (!%p408_p3), %s2132_s26, 0 }
  0x43   : > { %s484_s16 = scalar_select %p483_p4, %s2136_s27, 3 }
  0x44   : > { %s2605_s6 = smov (!%p477_p5, %s1601_s6), 31  ;;  %s2607_s10 = smov (!%p495_p6, %s1606_s10), 31 }
  0x45   : > { %s1604_s19 = sshll.u32 %s484_s16, 5  ;;  %s1602_s17 = sshll.u32 %s2605_s6, 2 }
  0x46   : > { %s488_s3 = sadd.s32 %s1604_s19, %s2605_s6  ;;  %s2345_s24 = scalar_lea.vmem %s2535_s0, %s1602_s17 }
  0x47   : > { %s1605_s14 = sshll.u32 %s488_s3, 3  ;;  %s2355_s2 = scalar_lea.vmem %s2539_s4, %s1602_s17 }
  0x48   : > { %s2350_s29 = scalar_lea.vmem %s2536_s1, %s1605_s14  ;;  %s1612_s16 = sshll.u32 %s2605_s6, 3 }
  0x49   : > { %s498_s23 = sadd.s32 %s1604_s19, %s2607_s10  ;;  %s2361_s7 = scalar_lea.vmem %s2540_s5, %s1612_s16 }
  0x4a   : > { %s1608_s3 = sshll.u32 %s498_s23, 2  ;;  %s2573_s15 = sld [smem:[#allocation19_spill]] }
  0x4b   : > { %p518_p10 = pnand %p517_p8, %p516_p7  ;;  %s2369_s25 = scalar_lea.vmem [#allocation3], %s1599_s18 }
  0x4c   : > { %s2371_s11 = scalar_lea.vmem [#allocation4], %s1600_s13 }
  0x4d   : > { %521 = sbr.rel (%p518_p10) target bundleno = 91 (0x5b), region = 89 }
  0x50   : > { %s2367_s14 = scalar_lea.vmem %s2573_s15, %s1608_s3 }
  0x52   : > { %v2158_v16 = vmov 0.0  }
  0x53   : > { %522 = vst [vmem:[#allocation2 + $0x30] sm:$0xff] %v2158_v16  ;;  %523 = vst [vmem:[#allocation2] sm:$0xff] %v2158_v16 }
  0x54   : > { %524 = vst [vmem:[#allocation2 + $0x58] sm:$0xff] %v2158_v16  ;;  %525 = vst [vmem:[#allocation2 + $0x18] sm:$0xff] %v2158_v16 }
  0x55   : > { %526 = vst [vmem:[#allocation2 + $0x50] sm:$0xff] %v2158_v16  ;;  %527 = vst [vmem:[#allocation2 + $0x68] sm:$0xff] %v2158_v16 }
  0x56   : > { %528 = vst [vmem:[#allocation2 + $0x8] sm:$0xff] %v2158_v16  ;;  %529 = vst [vmem:[#allocation2 + $0x48] sm:$0xff] %v2158_v16 }
  0x57   : > { %530 = vst [vmem:[#allocation2 + $0x40] sm:$0xff] %v2158_v16  ;;  %531 = vst [vmem:[#allocation2 + $0x20] sm:$0xff] %v2158_v16 }
  0x58   : > { %532 = vst [vmem:[#allocation2 + $0x10] sm:$0xff] %v2158_v16  ;;  %533 = vst [vmem:[#allocation2 + $0x38] sm:$0xff] %v2158_v16 }
  0x59   : > { %534 = vst [vmem:[#allocation2 + $0x60] sm:$0xff] %v2158_v16  ;;  %535 = vst [vmem:[#allocation2 + $0x70] sm:$0xff] %v2158_v16 }
  0x5a   : > { %536 = vst [vmem:[#allocation2 + $0x78] sm:$0xff] %v2158_v16  ;;  %537 = vst [vmem:[#allocation2 + $0x28] sm:$0xff] %v2158_v16 }
  0x5b PF: > { %v2006_v17 = vld [vmem:[%s2367_s14 + $0x38] sm:$0xff]   ;;  %v2007_v18 = vld [vmem:[%s2367_s14 + $0x30] sm:$0xff]   ;;  %v2008_v19 = vld [vmem:[%s2367_s14 + $0x28] sm:$0xff]   ;;  %v2159_v43 = vmov 0   ;;  %p1108_p11 = scmp.eq.s32.totalorder %s2136_s27, 3  ;;  %p1109_p12 = scmp.eq.s32.totalorder %s2132_s26, 1 }
  0x5c   : > { %1832 = vmatprep.subr.bf16.mxu0 %v2006_v17  ;;  %v2014_v20 = vld [vmem:[%s2345_s24] sm:$0xff]   ;;  %v2022_v22 = vld [vmem:[%s2369_s25 + $0x38] sm:$0xff]   ;;  %v2023_v23 = vld [vmem:[%s2369_s25 + $0x30] sm:$0xff]   ;;  %2005 = vset.pattern.permute.xlu1 %v2159_v43 }
  0x5d   : > { %1833 = vmatpush3.bf16.xpose.msra.mxu0 %v2006_v17  ;;  %1848 = vmatprep.mubr.bf16.mxu0 %v2014_v20  ;;  %v2009_v21 = vld [vmem:[%s2367_s14 + $0x20] sm:$0xff]   ;;  %v2010_v24 = vld [vmem:[%s2367_s14 + $0x18] sm:$0xff]   ;;  %v2024_v25 = vld [vmem:[%s2369_s25 + $0x28] sm:$0xff]   ;;  %p2415_p0 = pnand %p1109_p12, %p1108_p11 }
  0x5e   : > { %1834 = vmatprep.subr.bf16.mxu0 %v2007_v18  ;;  %1864 = vmatprep.subr.bf16.mxu1 %v2022_v22  ;;  %v2011_v26 = vld [vmem:[%s2367_s14 + $0x10] sm:$0xff]   ;;  %v2025_v27 = vld [vmem:[%s2369_s25 + $0x20] sm:$0xff]   ;;  %v2012_v28 = vld [vmem:[%s2367_s14 + $0x8] sm:$0xff]  }
  0x5f   : > { %1865 = vmatpush3.bf16.xpose.msra.mxu1 %v2022_v22  ;;  %v2026_v29 = vld [vmem:[%s2369_s25 + $0x18] sm:$0xff]   ;;  %v2013_v30 = vld [vmem:[%s2367_s14] sm:$0xff]   ;;  %v2027_v31 = vld [vmem:[%s2369_s25 + $0x10] sm:$0xff]   ;;  %2004 = vset.pattern.permute.xlu0 %v2159_v43 }
  0x60   : > { %1866 = vmatprep.subr.bf16.mxu1 %v2023_v23  ;;  %v2028_v32 = vld [vmem:[%s2369_s25 + $0x8] sm:$0xff]   ;;  %v2016_v34 = vld [vmem:[%s2345_s24 + $0x10] sm:$0xff]   ;;  %v2017_v35 = vld [vmem:[%s2345_s24 + $0x18] sm:$0xff]  }
  0x61   : > { %v2015_v33 = vld [vmem:[%s2345_s24 + $0x8] sm:$0xff]   ;;  %v2018_v36 = vld [vmem:[%s2345_s24 + $0x20] sm:$0xff]   ;;  %v2020_v38 = vld [vmem:[%s2345_s24 + $0x30] sm:$0xff]  }
  0x62   : > { %v2019_v37 = vld [vmem:[%s2345_s24 + $0x28] sm:$0xff]   ;;  %v2021_v39 = vld [vmem:[%s2345_s24 + $0x38] sm:$0xff]   ;;  %v2029_v40 = vld [vmem:[%s2369_s25] sm:$0xff]  }
  0x63   : > { %v966_v41 = vld [vmem:[%s2350_s29 + $0x10] sm:$0xff]  ;;  %v964_v42 = vld [vmem:[%s2350_s29] sm:$0xff]  ;;  %v967_v44 = vld [vmem:[%s2350_s29 + $0x18] sm:$0xff] }
  0x64   : > { %992 = vperm.xlu1 %2005, %v966_v41   ;;  %982 = vperm.xlu0 %2004, %v964_v42   ;;  %v965_v45 = vld [vmem:[%s2350_s29 + $0x8] sm:$0xff]  ;;  %v968_v47 = vld [vmem:[%s2350_s29 + $0x20] sm:$0xff]  ;;  %v971_v48 = vld [vmem:[%s2350_s29 + $0x38] sm:$0xff] }
  0x65   : > { %1835 = vmatpush3.bf16.xpose.msra.mxu0 %v2007_v18  ;;  %v969_v46 = vld [vmem:[%s2350_s29 + $0x28] sm:$0xff]  ;;  %v970_v49 = vld [vmem:[%s2350_s29 + $0x30] sm:$0xff]  ;;  %v972_v51 = vld [vmem:[%s2350_s29 + $0x40] sm:$0xff] }
  0x66   : > { %1836 = vmatprep.subr.bf16.mxu0 %v2008_v19  ;;  %v973_v50 = vld [vmem:[%s2350_s29 + $0x48] sm:$0xff]  ;;  %v975_v52 = vld [vmem:[%s2350_s29 + $0x58] sm:$0xff]  ;;  %v974_v53 = vld [vmem:[%s2350_s29 + $0x50] sm:$0xff] }
  0x67   : > { %1867 = vmatpush3.bf16.xpose.msra.mxu1 %v2023_v23  ;;  %v977_v54 = vld [vmem:[%s2350_s29 + $0x68] sm:$0xff]  ;;  %v976_v55 = vld [vmem:[%s2350_s29 + $0x60] sm:$0xff]  ;;  %v979_v56 = vld [vmem:[%s2350_s29 + $0x78] sm:$0xff] }
  0x68   : > { %1868 = vmatprep.subr.bf16.mxu1 %v2024_v25  ;;  %997 = vperm.xlu1 %2005, %v967_v44   ;;  %v978_v57 = vld [vmem:[%s2350_s29 + $0x70] sm:$0xff]  ;;  %v950_v42 = vld [vmem:[#allocation2 + $0x58] sm:$0xff] }
  0x69   : > { %987 = vperm.xlu0 %2004, %v965_v45   ;;  %v948_v45 = vld [vmem:[#allocation2 + $0x30] sm:$0xff] }
  0x6c   : > { %1007 = vperm.xlu1 %2005, %v969_v46  }
  0x6d   : > { %1837 = vmatpush3.bf16.xpose.msra.mxu0 %v2008_v19  ;;  %1002 = vperm.xlu0 %2004, %v968_v47  }
  0x6e   : > { %1838 = vmatprep.subr.bf16.mxu0 %v2009_v21 }
  0x6f   : > { %1869 = vmatpush3.bf16.xpose.msra.mxu1 %v2024_v25 }
  0x70   : > { %1870 = vmatprep.subr.bf16.mxu1 %v2025_v27  ;;  %1017 = vperm.xlu1 %2005, %v971_v48  }
  0x71   : > { %1012 = vperm.xlu0 %2004, %v970_v49  }
  0x74   : > { %1027 = vperm.xlu1 %2005, %v973_v50   ;;  %v951_v50 = vld [vmem:[#allocation2 + $0x18] sm:$0xff] }
  0x75   : > { %1839 = vmatpush3.bf16.xpose.msra.mxu0 %v2009_v21  ;;  %1022 = vperm.xlu0 %2004, %v972_v51  }
  0x76   : > { %1840 = vmatprep.subr.bf16.mxu0 %v2010_v24 }
  0x77   : > { %1871 = vmatpush3.bf16.xpose.msra.mxu1 %v2025_v27 }
  0x78   : > { %1872 = vmatprep.subr.bf16.mxu1 %v2026_v29  ;;  %1037 = vperm.xlu1 %2005, %v975_v52  }
  0x79   : > { %1032 = vperm.xlu0 %2004, %v974_v53  }
  0x7c   : > { %1047 = vperm.xlu1 %2005, %v977_v54  }
  0x7d   : > { %1841 = vmatpush3.bf16.xpose.msra.mxu0 %v2010_v24  ;;  %1042 = vperm.xlu0 %2004, %v976_v55   ;;  %v949_v55 = vld [vmem:[#allocation2] sm:$0xff] }
  0x7e   : > { %1842 = vmatprep.subr.bf16.mxu0 %v2011_v26 }
  0x7f   : > { %1873 = vmatpush3.bf16.xpose.msra.mxu1 %v2026_v29 }
  0x80   : > { %1874 = vmatprep.subr.bf16.mxu1 %v2027_v31  ;;  %1057 = vperm.xlu1 %2005, %v979_v56  }
  0x81   : > { %1052 = vperm.xlu0 %2004, %v978_v57  }
  0x85   : > { %1843 = vmatpush3.bf16.xpose.msra.mxu0 %v2011_v26 }
  0x86   : > { %1844 = vmatprep.subr.bf16.mxu0 %v2012_v28 }
  0x87   : > { %1875 = vmatpush3.bf16.xpose.msra.mxu1 %v2027_v31 }
  0x88   : > { %1876 = vmatprep.subr.bf16.mxu1 %v2028_v32 }
  0x8d   : > { %1845 = vmatpush3.bf16.xpose.msra.mxu0 %v2012_v28 }
  0x8e   : > { %1846 = vmatprep.subr.bf16.mxu0 %v2013_v30 }
  0x8f   : > { %1877 = vmatpush3.bf16.xpose.msra.mxu1 %v2028_v32 }
  0x90   : > { %1878 = vmatprep.subr.bf16.mxu1 %v2029_v40 }
  0x95   : > { %1847 = vmatpush3.bf16.xpose.msra.mxu0 %v2013_v30 }
  0x97   : > { %1879 = vmatpush3.bf16.xpose.msra.mxu1 %v2029_v40 }
  0x9c   : > { %1849 = vmatmul.mubr.bf16.vlgmr.msra.gmra.mxu0 %v2015_v33 }
  0x9d   : > { %1852 = vmatprep.mubr.bf16.mxu0 %v2016_v34 }
  0xa4   : > { %1853 = vmatmul.mubr.bf16.gmra.mxu0 %v2017_v35 }
  0xa5   : > { %1856 = vmatprep.mubr.bf16.mxu0 %v2018_v36 }
  0xac   : > { %1857 = vmatmul.mubr.bf16.gmra.mxu0 %v2019_v37 }
  0xad   : > { %1860 = vmatprep.mubr.bf16.mxu0 %v2020_v38 }
  0xb4   : > { %1861 = vmatmul.mubr.bf16.gmra.mxu0 %v2021_v39 }
  0xdf   : > { %v983_v34 = vpop.permute.xlu0 %982  ;;  %v993_v35 = vpop.permute.xlu1 %992 }
  0xe3   : > { %v998_v37 = vpop.permute.xlu1 %997 }
  0xe4   : > { %v988_v36 = vpop.permute.xlu0 %987 }
  0xe7   : > { %v1008_v39 = vpop.permute.xlu1 %1007 }
  0xe8   : > { %v1003_v38 = vpop.permute.xlu0 %1002 }
  0xeb   : > { %v1018_v48 = vpop.permute.xlu1 %1017 }
  0xec   : > { %v1013_v40 = vpop.permute.xlu0 %1012 }
  0xf0   : > { %v1023_v53 = vpop.permute.xlu0 %1022 }
 0x15c   : > { %v1850_v58 = vpop.f32.mrf.mxu0 }
 0x15d   : > { %v765_v1 = vmax.f32 %v1850_v58, 0.0 }
 0x15e   : > { %v700_v59 = vpop.f32.mrf.mxu0 }
 0x15f   : > { %v763_v63 = vmax.f32 %v700_v59, 0.0  ;;  %v954_v59 = vld [vmem:[#allocation2 + $0x8] sm:$0xff] }
 0x160   : > { %v1851_v60 = vpop.f32.mrf.mxu0 }
 0x161   : > { %v766_v61 = vmax.f32 %v1851_v60, 0.0 }
 0x162   : > { %v703_v62 = vpop.f32.mrf.mxu0 }
 0x163   : > { %v764_v0 = vmax.f32 %v703_v62, 0.0  ;;  %v780_v4 = vpack.c.bf16 %v766_v61, %v765_v1  ;;  %v1028_v62 = vpop.permute.xlu1 %1027 }
 0x164   : > { %v1854_v2 = vpop.f32.mrf.mxu0 }
 0x165   : > { %v779_v3 = vpack.c.bf16 %v764_v0, %v763_v63  ;;  %v769_v11 = vmax.f32 %v1854_v2, 0.0  ;;  %v952_v0 = vld [vmem:[#allocation2 + $0x50] sm:$0xff] }
 0x166   : > { %v716_v5 = vpop.f32.mrf.mxu0 }
 0x167   : > { %1880 = vmatprep.mubr.bf16.mxu1 %v779_v3  ;;  %v767_v9 = vmax.f32 %v716_v5, 0.0  ;;  %v1033_v3 = vpop.permute.xlu0 %1032  ;;  %v955_v5 = vld [vmem:[#allocation2 + $0x48] sm:$0xff] }
 0x168   : > { %v1855_v6 = vpop.f32.mrf.mxu0  ;;  %1881 = vmatmul.mubr.bf16.vlgmr.msra.gmra.mxu1 %v780_v4 }
 0x169   : > { %v770_v7 = vmax.f32 %v1855_v6, 0.0 }
 0x16a   : > { %v719_v8 = vpop.f32.mrf.mxu0 }
 0x16b   : > { %v768_v10 = vmax.f32 %v719_v8, 0.0  ;;  %v782_v14 = vpack.c.bf16 %v770_v7, %v769_v11 }
 0x16c   : > { %v1858_v12 = vpop.f32.mrf.mxu0 }
 0x16d   : > { %v781_v13 = vpack.c.bf16 %v768_v10, %v767_v9  ;;  %v773_v21 = vmax.f32 %v1858_v12, 0.0  ;;  %v953_v9 = vld [vmem:[#allocation2 + $0x68] sm:$0xff]  ;;  %v1038_v12 = vpop.permute.xlu1 %1037 }
 0x16e   : > { %v732_v15 = vpop.f32.mrf.mxu0 }
 0x16f   : > { %1884 = vmatprep.mubr.bf16.mxu1 %v781_v13  ;;  %v771_v19 = vmax.f32 %v732_v15, 0.0 }
 0x170   : > { %v1859_v16 = vpop.f32.mrf.mxu0  ;;  %1885 = vmatmul.mubr.bf16.gmra.mxu1 %v782_v14  ;;  %v958_v14 = vld [vmem:[#allocation2 + $0x10] sm:$0xff] }
 0x171   : > { %v774_v17 = vmax.f32 %v1859_v16, 0.0 }
 0x172   : > { %v735_v18 = vpop.f32.mrf.mxu0 }
 0x173   : > { %v772_v20 = vmax.f32 %v735_v18, 0.0  ;;  %v784_v24 = vpack.c.bf16 %v774_v17, %v773_v21  ;;  %v1043_v17 = vpop.permute.xlu0 %1042 }
 0x174   : > { %v1862_v22 = vpop.f32.mrf.mxu0 }
 0x175   : > { %v783_v23 = vpack.c.bf16 %v772_v20, %v771_v19  ;;  %v777_v31 = vmax.f32 %v1862_v22, 0.0  ;;  %v956_v19 = vld [vmem:[#allocation2 + $0x40] sm:$0xff] }
 0x176   : > { %v748_v25 = vpop.f32.mrf.mxu0 }
 0x177   : > { %1888 = vmatprep.mubr.bf16.mxu1 %v783_v23  ;;  %v775_v29 = vmax.f32 %v748_v25, 0.0  ;;  %v959_v23 = vld [vmem:[#allocation2 + $0x38] sm:$0xff] }
 0x178   : > { %v1863_v26 = vpop.f32.mrf.mxu0  ;;  %1889 = vmatmul.mubr.bf16.gmra.mxu1 %v784_v24 }
 0x179   : > { %v778_v27 = vmax.f32 %v1863_v26, 0.0  ;;  %v1048_v26 = vpop.permute.xlu1 %1047 }
 0x17a   : > { %v751_v28 = vpop.f32.mrf.mxu0 }
 0x17b   : > { %v776_v30 = vmax.f32 %v751_v28, 0.0  ;;  %v786_v33 = vpack.c.bf16 %v778_v27, %v777_v31  ;;  %v957_v28 = vld [vmem:[#allocation2 + $0x20] sm:$0xff]  ;;  %v1053_v31 = vpop.permute.xlu0 %1052 }
 0x17d   : > { %v785_v32 = vpack.c.bf16 %v776_v30, %v775_v29 }
 0x17f   : > { %1892 = vmatprep.mubr.bf16.mxu1 %v785_v32 }
 0x180   : > { %1893 = vmatmul.mubr.bf16.gmra.mxu1 %v786_v33  ;;  %v962_v33 = vld [vmem:[#allocation2 + $0x78] sm:$0xff] }
 0x228   : > { %v1882_v41 = vpop.f32.mrf.mxu1 }
 0x229   : > { %v1062_v43 = vmul.f32 %v1882_v41, %v993_v35 }
 0x22a   : > { %v885_v44 = vpop.f32.mrf.mxu1 }
 0x22b   : > { %v1078_v46 = vadd.f32 %v1062_v43, %v950_v42  ;;  %v1060_v47 = vmul.f32 %v983_v34, %v885_v44  ;;  %v963_v42 = vld [vmem:[#allocation2 + $0x28] sm:$0xff] }
 0x22c   : > { %v1883_v49 = vpop.f32.mrf.mxu1 }
 0x22d   : > { %1094 = vst [vmem:[#allocation2 + $0x58] sm:$0xff] %v1078_v46  ;;  %v1076_v51 = vadd.f32 %v1060_v47, %v948_v45  ;;  %v1063_v52 = vmul.f32 %v1883_v49, %v998_v37  ;;  %v960_v37 = vld [vmem:[#allocation2 + $0x60] sm:$0xff]  ;;  %v961_v46 = vld [vmem:[#allocation2 + $0x70] sm:$0xff] }
 0x22e   : > { %v888_v54 = vpop.f32.mrf.mxu1 }
 0x22f   : > { %1092 = vst [vmem:[#allocation2 + $0x30] sm:$0xff] %v1076_v51  ;;  %v1079_v56 = vadd.f32 %v1063_v52, %v951_v50  ;;  %v1061_v57 = vmul.f32 %v988_v36, %v888_v54 }
 0x230   : > { %v1886_v58 = vpop.f32.mrf.mxu1 }
 0x231   : > { %1095 = vst [vmem:[#allocation2 + $0x18] sm:$0xff] %v1079_v56  ;;  %v1077_v60 = vadd.f32 %v1061_v57, %v949_v55  ;;  %v1066_v61 = vmul.f32 %v1886_v58, %v1013_v40  ;;  %v1058_v40 = vpop.permute.xlu1 %1057 }
 0x232   : > { %v901_v63 = vpop.f32.mrf.mxu1 }
 0x233   : > { %1093 = vst [vmem:[#allocation2] sm:$0xff] %v1077_v60  ;;  %v1082_v1 = vadd.f32 %v1066_v61, %v954_v59  ;;  %v1064_v2 = vmul.f32 %v1003_v38, %v901_v63 }
 0x234   : > { %v1887_v4 = vpop.f32.mrf.mxu1 }
 0x235   : > { %1098 = vst [vmem:[#allocation2 + $0x8] sm:$0xff] %v1082_v1  ;;  %v1080_v6 = vadd.f32 %v1064_v2, %v952_v0  ;;  %v1067_v7 = vmul.f32 %v1887_v4, %v1018_v48 }
 0x236   : > { %v904_v8 = vpop.f32.mrf.mxu1 }
 0x237   : > { %1096 = vst [vmem:[#allocation2 + $0x50] sm:$0xff] %v1080_v6  ;;  %v1083_v10 = vadd.f32 %v1067_v7, %v955_v5  ;;  %v1065_v11 = vmul.f32 %v1008_v39, %v904_v8 }
 0x238   : > { %v1890_v13 = vpop.f32.mrf.mxu1 }
 0x239   : > { %1099 = vst [vmem:[#allocation2 + $0x48] sm:$0xff] %v1083_v10  ;;  %v1081_v15 = vadd.f32 %v1065_v11, %v953_v9  ;;  %v1070_v16 = vmul.f32 %v1890_v13, %v1033_v3 }
 0x23a   : > { %v917_v18 = vpop.f32.mrf.mxu1 }
 0x23b   : > { %1097 = vst [vmem:[#allocation2 + $0x68] sm:$0xff] %v1081_v15  ;;  %v1086_v20 = vadd.f32 %v1070_v16, %v958_v14  ;;  %v1068_v21 = vmul.f32 %v1023_v53, %v917_v18 }
 0x23c   : > { %v1891_v22 = vpop.f32.mrf.mxu1 }
 0x23d   : > { %1102 = vst [vmem:[#allocation2 + $0x10] sm:$0xff] %v1086_v20  ;;  %v1084_v24 = vadd.f32 %v1068_v21, %v956_v19  ;;  %v1071_v25 = vmul.f32 %v1891_v22, %v1038_v12 }
 0x23e   : > { %v920_v27 = vpop.f32.mrf.mxu1 }
 0x23f   : > { %1100 = vst [vmem:[#allocation2 + $0x40] sm:$0xff] %v1084_v24  ;;  %v1087_v29 = vadd.f32 %v1071_v25, %v959_v23  ;;  %v1069_v30 = vmul.f32 %v1028_v62, %v920_v27 }
 0x240   : > { %v1894_v32 = vpop.f32.mrf.mxu1 }
 0x241   : > { %1103 = vst [vmem:[#allocation2 + $0x38] sm:$0xff] %v1087_v29  ;;  %v1085_v34 = vadd.f32 %v1069_v30, %v957_v28  ;;  %v1074_v35 = vmul.f32 %v1894_v32, %v1053_v31 }
 0x242   : > { %v933_v36 = vpop.f32.mrf.mxu1 }
 0x243   : > { %1101 = vst [vmem:[#allocation2 + $0x20] sm:$0xff] %v1085_v34  ;;  %v1090_v38 = vadd.f32 %v1074_v35, %v962_v33  ;;  %v1072_v39 = vmul.f32 %v1043_v17, %v933_v36 }
 0x244   : > { %v1895_v41 = vpop.f32.mrf.mxu1 }
 0x245   : > { %1106 = vst [vmem:[#allocation2 + $0x78] sm:$0xff] %v1090_v38  ;;  %v1088_v43 = vadd.f32 %v1072_v39, %v960_v37  ;;  %v1075_v44 = vmul.f32 %v1895_v41, %v1058_v40 }
 0x246   : > { %v936_v45 = vpop.f32.mrf.mxu1 }
 0x247   : > { %1104 = vst [vmem:[#allocation2 + $0x60] sm:$0xff] %v1088_v43  ;;  %v1091_v47 = vadd.f32 %v1075_v44, %v963_v42  ;;  %v1073_v48 = vmul.f32 %v1048_v26, %v936_v45  ;;  %1113 = sbr.rel (%p2415_p0) target bundleno = 751 (0x2ef), region = 93 }
 0x249   : > { %1107 = vst [vmem:[#allocation2 + $0x28] sm:$0xff] %v1091_v47  ;;  %v1089_v49 = vadd.f32 %v1073_v48, %v961_v46 }
 0x24b   : > { %1105 = vst [vmem:[#allocation2 + $0x70] sm:$0xff] %v1089_v49 }
 0x24c   : > { %v1148_v50 = vld [vmem:[%s2361_s7 + $0x10] sm:$0xff]  ;;  %v1146_v51 = vld [vmem:[%s2361_s7] sm:$0xff]  ;;  %v2160_v52 = vmov 0   ;;  %v1149_v53 = vld [vmem:[%s2361_s7 + $0x18] sm:$0xff] }
 0x24d   : > { %2031 = vset.pattern.permute.xlu1 %v2160_v52  ;;  %2030 = vset.pattern.permute.xlu0 %v2160_v52  ;;  %v1147_v54 = vld [vmem:[%s2361_s7 + $0x8] sm:$0xff]  ;;  %v1150_v56 = vld [vmem:[%s2361_s7 + $0x20] sm:$0xff]  ;;  %v1153_v57 = vld [vmem:[%s2361_s7 + $0x38] sm:$0xff] }
 0x24e   : > { %1206 = vperm.xlu1 %2031, %v1148_v50   ;;  %1196 = vperm.xlu0 %2030, %v1146_v51   ;;  %v1151_v55 = vld [vmem:[%s2361_s7 + $0x28] sm:$0xff]  ;;  %v1152_v58 = vld [vmem:[%s2361_s7 + $0x30] sm:$0xff]  ;;  %v1154_v60 = vld [vmem:[%s2361_s7 + $0x40] sm:$0xff] }
 0x24f   : > { %v1155_v59 = vld [vmem:[%s2361_s7 + $0x48] sm:$0xff]  ;;  %v1157_v61 = vld [vmem:[%s2361_s7 + $0x58] sm:$0xff]  ;;  %v1156_v62 = vld [vmem:[%s2361_s7 + $0x50] sm:$0xff] }
 0x250   : > { %v1159_v63 = vld [vmem:[%s2361_s7 + $0x68] sm:$0xff]  ;;  %v1158_v0 = vld [vmem:[%s2361_s7 + $0x60] sm:$0xff]  ;;  %v1161_v1 = vld [vmem:[%s2361_s7 + $0x78] sm:$0xff] }
 0x251   : > { %v1160_v2 = vld [vmem:[%s2361_s7 + $0x70] sm:$0xff]  ;;  %v1786_v3 = vld [vmem:[%s2345_s24 + $0x8] sm:$0xff]   ;;  %v1708_v4 = vld [vmem:[%s2345_s24] sm:$0xff]  }
 0x252   : > { %1211 = vperm.xlu1 %2031, %v1149_v53   ;;  %1201 = vperm.xlu0 %2030, %v1147_v54   ;;  %v1713_v5 = vunpack.c.l.bf16 %v1786_v3  ;;  %v1779_v6 = vld [vmem:[%s2355_s2 + $0x8] sm:$0xff]   ;;  %v1709_v7 = vunpack.c.l.bf16 %v1708_v4  ;;  %v1676_v8 = vld [vmem:[%s2355_s2] sm:$0xff]   ;;  %v1714_v15 = vunpack.c.h.bf16 %v1786_v3  ;;  %v1710_v16 = vunpack.c.h.bf16 %v1708_v4  ;;  %v1787_v17 = vld [vmem:[%s2345_s24 + $0x10] sm:$0xff]  }
 0x253   : > { %v1681_v10 = vunpack.c.l.bf16 %v1779_v6  ;;  %v1677_v12 = vunpack.c.l.bf16 %v1676_v8  ;;  %v1682_v18 = vunpack.c.h.bf16 %v1779_v6  ;;  %v1678_v19 = vunpack.c.h.bf16 %v1676_v8  ;;  %v1780_v24 = vld [vmem:[%s2355_s2 + $0x10] sm:$0xff]   ;;  %v1308_v25 = vld [vmem:[#allocation2 + $0x58] sm:$0xff]  ;;  %v1307_v33 = vld [vmem:[#allocation2] sm:$0xff] }
 0x254   : > { %v1306_v26 = vld [vmem:[#allocation2 + $0x30] sm:$0xff]  ;;  %v1718_v29 = vunpack.c.h.bf16 %v1787_v17  ;;  %v1717_v30 = vunpack.c.l.bf16 %v1787_v17  ;;  %v1788_v31 = vld [vmem:[%s2345_s24 + $0x18] sm:$0xff]   ;;  %v1686_v36 = vunpack.c.h.bf16 %v1780_v24  ;;  %v1685_v37 = vunpack.c.l.bf16 %v1780_v24  ;;  %v1789_v49 = vld [vmem:[%s2345_s24 + $0x20] sm:$0xff]  }
 0x255   : > { %v1309_v32 = vld [vmem:[#allocation2 + $0x18] sm:$0xff]  ;;  %v1722_v43 = vunpack.c.h.bf16 %v1788_v31  ;;  %v1721_v44 = vunpack.c.l.bf16 %v1788_v31  ;;  %v1311_v50 = vld [vmem:[#allocation2 + $0x68] sm:$0xff]  ;;  %v1310_v51 = vld [vmem:[#allocation2 + $0x50] sm:$0xff] }
 0x256   : > { %1221 = vperm.xlu1 %2031, %v1151_v55   ;;  %1216 = vperm.xlu0 %2030, %v1150_v56   ;;  %v1781_v38 = vld [vmem:[%s2355_s2 + $0x18] sm:$0xff]   ;;  %v1790_v3 = vld [vmem:[%s2345_s24 + $0x28] sm:$0xff]  }
 0x257   : > { %v1690_v52 = vunpack.c.h.bf16 %v1781_v38  ;;  %v1689_v53 = vunpack.c.l.bf16 %v1781_v38  ;;  %v1313_v4 = vld [vmem:[#allocation2 + $0x48] sm:$0xff]  ;;  %v1317_v38 = vld [vmem:[#allocation2 + $0x38] sm:$0xff] }
 0x25a   : > { %1231 = vperm.xlu1 %2031, %v1153_v57   ;;  %1226 = vperm.xlu0 %2030, %v1152_v58   ;;  %v1782_v58 = vld [vmem:[%s2355_s2 + $0x20] sm:$0xff]  }
 0x25b   : > { %v1694_v6 = vunpack.c.h.bf16 %v1782_v58 }
 0x25e   : > { %1241 = vperm.xlu1 %2031, %v1155_v59   ;;  %1236 = vperm.xlu0 %2030, %v1154_v60  }
 0x262   : > { %1251 = vperm.xlu1 %2031, %v1157_v61   ;;  %1246 = vperm.xlu0 %2030, %v1156_v62   ;;  %v1726_v61 = vunpack.c.h.bf16 %v1789_v49  ;;  %v1725_v62 = vunpack.c.l.bf16 %v1789_v49 }
 0x266   : > { %1261 = vperm.xlu1 %2031, %v1159_v63   ;;  %1256 = vperm.xlu0 %2030, %v1158_v0  }
 0x26a   : > { %1271 = vperm.xlu1 %2031, %v1161_v1   ;;  %1266 = vperm.xlu0 %2030, %v1160_v2  }
 0x2c9   : > { %v1207_v9 = vpop.permute.xlu1 %1206  ;;  %v1197_v11 = vpop.permute.xlu0 %1196 }
 0x2ca   : > { %v1276_v13 = vmul.f32 %v1713_v5, %v1207_v9  ;;  %v1274_v14 = vmul.f32 %v1709_v7, %v1197_v11  ;;  %v1312_v5 = vld [vmem:[#allocation2 + $0x8] sm:$0xff] }
 0x2cb   : > { %v1783_v11 = vld [vmem:[%s2355_s2 + $0x28] sm:$0xff]  }
 0x2cc   : > { %v1292_v20 = vadd.f32 %v1681_v10, %v1276_v13  ;;  %v1290_v21 = vadd.f32 %v1677_v12, %v1274_v14  ;;  %v1693_v10 = vunpack.c.l.bf16 %v1782_v58  ;;  %v1730_v14 = vunpack.c.h.bf16 %v1790_v3 }
 0x2cd   : > { %v1212_v22 = vpop.permute.xlu1 %1211  ;;  %v1202_v23 = vpop.permute.xlu0 %1201 }
 0x2ce   : > { %v1277_v27 = vmul.f32 %v1714_v15, %v1212_v22  ;;  %v1275_v28 = vmul.f32 %v1710_v16, %v1202_v23  ;;  %v1324_v39 = vadd.f32 %v1308_v25, %v1292_v20  ;;  %v1322_v40 = vadd.f32 %v1306_v26, %v1290_v21  ;;  %v1791_v20 = vld [vmem:[%s2345_s24 + $0x30] sm:$0xff]   ;;  %v1315_v21 = vld [vmem:[#allocation2 + $0x20] sm:$0xff] }
 0x2cf   : > { %v1729_v15 = vunpack.c.l.bf16 %v1790_v3  ;;  %v1314_v22 = vld [vmem:[#allocation2 + $0x40] sm:$0xff]  ;;  %v1698_v23 = vunpack.c.h.bf16 %v1783_v11  ;;  %v1734_v31 = vunpack.c.h.bf16 %v1791_v20  ;;  %v1321_v3 = vld [vmem:[#allocation2 + $0x28] sm:$0xff] }
 0x2d0   : > { %v1293_v34 = vadd.f32 %v1682_v18, %v1277_v27  ;;  %v1291_v35 = vadd.f32 %v1678_v19, %v1275_v28  ;;  %v1697_v27 = vunpack.c.l.bf16 %v1783_v11  ;;  %v1784_v28 = vld [vmem:[%s2355_s2 + $0x30] sm:$0xff]  }
 0x2d1   : > { %v1222_v41 = vpop.permute.xlu1 %1221  ;;  %v1217_v42 = vpop.permute.xlu0 %1216 }
 0x2d2   : > { %v1325_v45 = vadd.f32 %v1309_v32, %v1293_v34  ;;  %v1323_v46 = vadd.f32 %v1307_v33, %v1291_v35  ;;  %v1279_v47 = vmul.f32 %v1718_v29, %v1222_v41  ;;  %v1278_v48 = vmul.f32 %v1717_v30, %v1217_v42 }
 0x2d3   : > { %v1733_v32 = vunpack.c.l.bf16 %v1791_v20 }
 0x2d4   : > { %v1747_v54 = vpack.c.bf16 %v1325_v45, %v1324_v39  ;;  %v1742_v55 = vpack.c.bf16 %v1323_v46, %v1322_v40  ;;  %v1295_v56 = vadd.f32 %v1686_v36, %v1279_v47  ;;  %v1294_v57 = vadd.f32 %v1685_v37, %v1278_v48  ;;  %v1792_v37 = vld [vmem:[%s2345_s24 + $0x38] sm:$0xff]   ;;  %v1316_v39 = vld [vmem:[#allocation2 + $0x10] sm:$0xff] }
 0x2d5   : > { %v1232_v59 = vpop.permute.xlu1 %1231  ;;  %v1227_v60 = vpop.permute.xlu0 %1226  ;;  %v1702_v40 = vunpack.c.h.bf16 %v1784_v28  ;;  %v1785_v45 = vld [vmem:[%s2355_s2 + $0x38] sm:$0xff]   ;;  %v1738_v48 = vunpack.c.h.bf16 %v1792_v37  ;;  %v1737_v49 = vunpack.c.l.bf16 %v1792_v37 }
 0x2d6   : > { %1793 = vst [vmem:[%s2371_s11 + $0x8] sm:$0xff] %v1747_v54   ;;  %1743 = vst [vmem:[%s2371_s11] sm:$0xff] %v1742_v55   ;;  %v1327_v63 = vadd.f32 %v1311_v50, %v1295_v56  ;;  %v1326_v0 = vadd.f32 %v1310_v51, %v1294_v57  ;;  %v1281_v1 = vmul.f32 %v1722_v43, %v1232_v59  ;;  %v1319_v54 = vld [vmem:[#allocation2 + $0x70] sm:$0xff]  ;;  %v1318_v55 = vld [vmem:[#allocation2 + $0x60] sm:$0xff]  ;;  %v1706_v56 = vunpack.c.h.bf16 %v1785_v45 }
 0x2d7   : > { %v1280_v2 = vmul.f32 %v1721_v44, %v1227_v60  ;;  %v1701_v44 = vunpack.c.l.bf16 %v1784_v28  ;;  %v1705_v60 = vunpack.c.l.bf16 %v1785_v45 }
 0x2d8   : > { %v1752_v7 = vpack.c.bf16 %v1327_v63, %v1326_v0  ;;  %v1297_v8 = vadd.f32 %v1690_v52, %v1281_v1 }
 0x2d9   : > { %v1296_v9 = vadd.f32 %v1689_v53, %v1280_v2  ;;  %v1242_v12 = vpop.permute.xlu1 %1241  ;;  %v1237_v13 = vpop.permute.xlu0 %1236 }
 0x2da   : > { %1794 = vst [vmem:[%s2371_s11 + $0x10] sm:$0xff] %v1752_v7   ;;  %v1329_v16 = vadd.f32 %v1313_v4, %v1297_v8  ;;  %v1283_v18 = vmul.f32 %v1726_v61, %v1242_v12  ;;  %v1282_v19 = vmul.f32 %v1725_v62, %v1237_v13  ;;  %v1320_v4 = vld [vmem:[#allocation2 + $0x78] sm:$0xff] }
 0x2db   : > { %v1328_v17 = vadd.f32 %v1312_v5, %v1296_v9 }
 0x2dc   : > { %v1299_v25 = vadd.f32 %v1694_v6, %v1283_v18  ;;  %v1298_v26 = vadd.f32 %v1693_v10, %v1282_v19 }
 0x2dd   : > { %v1757_v24 = vpack.c.bf16 %v1329_v16, %v1328_v17  ;;  %v1252_v29 = vpop.permute.xlu1 %1251  ;;  %v1247_v30 = vpop.permute.xlu0 %1246 }
 0x2de   : > { %v1331_v33 = vadd.f32 %v1315_v21, %v1299_v25  ;;  %v1330_v34 = vadd.f32 %v1314_v22, %v1298_v26  ;;  %v1285_v35 = vmul.f32 %v1730_v14, %v1252_v29  ;;  %v1284_v36 = vmul.f32 %v1729_v15, %v1247_v30 }
 0x2df   : > { %1795 = vst [vmem:[%s2371_s11 + $0x18] sm:$0xff] %v1757_v24  }
 0x2e0   : > { %v1762_v41 = vpack.c.bf16 %v1331_v33, %v1330_v34  ;;  %v1301_v42 = vadd.f32 %v1698_v23, %v1285_v35  ;;  %v1300_v43 = vadd.f32 %v1697_v27, %v1284_v36 }
 0x2e1   : > { %v1262_v46 = vpop.permute.xlu1 %1261  ;;  %v1257_v47 = vpop.permute.xlu0 %1256 }
 0x2e2   : > { %1796 = vst [vmem:[%s2371_s11 + $0x20] sm:$0xff] %v1762_v41   ;;  %v1333_v50 = vadd.f32 %v1317_v38, %v1301_v42  ;;  %v1332_v51 = vadd.f32 %v1316_v39, %v1300_v43  ;;  %v1287_v52 = vmul.f32 %v1734_v31, %v1262_v46  ;;  %v1286_v53 = vmul.f32 %v1733_v32, %v1257_v47 }
 0x2e4   : > { %v1767_v57 = vpack.c.bf16 %v1333_v50, %v1332_v51  ;;  %v1303_v58 = vadd.f32 %v1702_v40, %v1287_v52  ;;  %v1302_v59 = vadd.f32 %v1701_v44, %v1286_v53 }
 0x2e5   : > { %v1272_v61 = vpop.permute.xlu1 %1271  ;;  %v1267_v62 = vpop.permute.xlu0 %1266 }
 0x2e6   : > { %1797 = vst [vmem:[%s2371_s11 + $0x28] sm:$0xff] %v1767_v57   ;;  %v1335_v63 = vadd.f32 %v1319_v54, %v1303_v58  ;;  %v1334_v0 = vadd.f32 %v1318_v55, %v1302_v59  ;;  %v1289_v1 = vmul.f32 %v1738_v48, %v1272_v61  ;;  %v1288_v2 = vmul.f32 %v1737_v49, %v1267_v62 }
 0x2e8   : > { %v1772_v5 = vpack.c.bf16 %v1335_v63, %v1334_v0  ;;  %v1305_v6 = vadd.f32 %v1706_v56, %v1289_v1  ;;  %v1304_v7 = vadd.f32 %v1705_v60, %v1288_v2 }
 0x2ea   : > { %1798 = vst [vmem:[%s2371_s11 + $0x30] sm:$0xff] %v1772_v5   ;;  %v1337_v8 = vadd.f32 %v1321_v3, %v1305_v6  ;;  %v1336_v9 = vadd.f32 %v1320_v4, %v1304_v7 }
 0x2ec   : > { %v1777_v10 = vpack.c.bf16 %v1337_v8, %v1336_v9 }
 0x2ee   : > { %1799 = vst [vmem:[%s2371_s11 + $0x38] sm:$0xff] %v1777_v10  }
 0x2ef PF: > { %s1674_s2 = sshll.u32 %s2140_s28, 10  ;;  %s2575_s27 = sld [smem:[#allocation21_spill]] }
 0x2f0   : > { %s1432_s18 = sshll.u32 %s2371_s11, 4  ;;  %s2577_s13 = sand.u32 1, %s2116_s22   ;;  %s2468_s18 = int_to_ptr.vmem [resolvable:$true] %s1432_s18 }
 0x2f1   : > { %s2472_s6 = scalar_lea.sflag [#allocation5], %s2577_s13  ;;  %s2032_s10 = scalar_lea.vmem %s2468_s18, 1024 }
 0x2f2   : > { %p2033_p1 = scmp.ne.s32.totalorder %s2468_s18, %s2032_s10  ;;  %s2161_s28 = smov [#allocation4]  }
 0x2f3   : > { %s2036_s19 = sshll.u32 %s2161_s28, 4  ;;  %s2037_s19 = int_to_ptr.vmem [resolvable:$false] %s2036_s19 }
 0x2f4   : > { %p2034_p2 = pnand %p2033_p1, %p2285_p9  ;;  %s2038_s17 = scalar_lea.vmem %s2037_s19, 2048 }
 0x2f5   : > { %s2576_s9 = smov %s2575_s27  ;;  %s2465_s29 = scalar_lea.hbm %s2575_s27, %s1674_s2 }
 0x2f6   : > { %p2035_p3 = pneg %p2034_p2  ;;  %p2039_p4 = scmp.lt.s32.totalorder %s2468_s18, %s2037_s19 }
 0x2f7   : > { %p2040_p5 = scmp.lt.s32.totalorder %s2038_s17, %s2032_s10 }
 0x2f9   : > { %p2041_p6 = por %p2040_p5, %p2039_p4 }
 0x2fb   : > { %p2042_p7 = pnand %p2041_p6, %p2035_p3 }
 0x2fd   : > { %2045 = shalt.err (!%p2042_p7)
}
 0x2fe   : > { %s2046_s24 = scalar_lea.hbm %s2465_s29, 1024  ;;  %s2050_s3 = scalar_lea.hbm %s2576_s9, 2048 }
 0x2ff   : > { %p2047_p8 = scmp.ne.s32.totalorder %s2465_s29, %s2046_s24  ;;  %p2051_p12 = scmp.lt.s32.totalorder %s2465_s29, %s2576_s9 }
 0x300   : > { %p2052_p0 = scmp.lt.s32.totalorder %s2050_s3, %s2046_s24 }
 0x301   : > { %p2048_p10 = pnand %p2047_p8, %p2285_p9 }
 0x302   : > { %p2053_p1 = por %p2052_p0, %p2051_p12 }
 0x303   : > { %p2049_p11 = pneg %p2048_p10 }
 0x305   : > { %p2054_p2 = pnand %p2053_p1, %p2049_p11 }
 0x307   : > { %2057 = shalt.err (!%p2054_p2)
}
 0x308   : > { %s2162_s15 = smov 64   ;;  %s2163_s14 = smov 4  }
 0x309   : > { %1896 = dma.vmem_to_hbm [thread:$0]  (%p2285_p9), %s2468_s18, 1024, %s2465_s29, %s2472_s6, %s2162_s15, %s2162_s15, %s2163_s14  }
 0x30a PF: > { %s2578_s25 = sld [smem:[#allocation7_spill]]  ;;  %p1902_p3 = scmp.ge.s32.totalorder %s2156_s8, 2 }
 0x30c   : > { %p1899_p4 = pnand %p1902_p3, %p2301_p13 }
 0x30e   : > { %p1900_p5 = pneg %p1899_p4 }
 0x310   : > { %s1447_s21 = sand.u32 1, %s2578_s25  }
 0x311   : > { %s1448_s2 = scalar_lea.sflag [#allocation5], %s1447_s21 }
 0x312   : > { %2107 = dma.done.wait (%p1900_p5), %s1448_s2, 1024  }
 0x313   : > { %2109 = vsyncadd (%p1900_p5), %s1448_s2, 4294966272  ;;  %s19_s8 = sadd.s32 1, %s2156_s8   ;;  %s2580_s23 = sld [smem:[#allocation8_spill]] }
 0x314   : > { %p16_p6 = scmp.ge.s32.totalorder %s19_s8, 18   ;;  %s2581_s26 = sld [smem:[#allocation17_spill]] }
 0x315   : > { %s2582_s24 = sld [smem:[#allocation9_spill]]  ;;  %s2590_s21 = smov %s2116_s22 }
 0x316   : > { %s2583_s25 = sld [smem:[#allocation16_spill]] }
 0x317   : > { %s2584_s20 = sld [smem:[#allocation10_spill]] }
 0x318   : > { %s2585_s27 = sld [smem:[#allocation11_spill]] }
 0x319   : > { %s2586_s28 = sld [smem:[#allocation12_spill]]  ;;  %s2591_s22 = smov %s2580_s23 }
 0x31a   : > { %s2587_s29 = sld [smem:[#allocation13_spill]]  ;;  %s2592_s23 = smov %s2581_s26 }
 0x31b   : > { %s2588_s30 = sld [smem:[#allocation14_spill]]  ;;  %18 = sbr.rel (!%p16_p6) target bundleno = 11 (0xb), region = 148 }
 0x31c   : > { %s2589_s7 = sld [smem:[#allocation15_spill]] }
 0x31d   : > { %s2593_s26 = smov %s2584_s20 }
 0x320   :  { %1453 = vsyncpa [#allocation5], 1 }
 0x321   :  { %1455 = vsyncpa [#allocation5 + $0x1], 1 }

</bundles_post_ra>
